<compile_context>
chip_gen: v5e
topology: v5e:2x2
jax: 0.10.0
libtpu: 0.0.40
codegen_flags: <defaults>
</compile_context>

<pallas_src>
import functools

import jax
import jax.numpy as jnp
from jax.experimental import pallas as pl
from jax.experimental.pallas import tpu as pltpu


def _round_up(n, m):
    return ((n + m - 1) // m) * m


# --------------------------------------------------------------------------- #
# Kernel
# --------------------------------------------------------------------------- #
def _precnn_kernel(x_ref, w_ref, b_ref, o_ref, stack_ref, *,
                   n_layers, K, lp, L, matmul_dtype):
    """x_ref/o_ref: (Cpad, TL) f32 with TL = batch_block * L (whole sequences).
    w_ref: (n_layers, Cpad, K*Cpad) f32; b_ref: (n_layers, Cpad, 1) f32.
    stack_ref: VMEM scratch (K*Cpad, TL) f32 holding the K conv taps per layer."""
    Cpad, TL = x_ref.shape
    h = x_ref[...]

    # Per-sequence lane position, hoisted ONCE per grid step at full (Cpad, TL)
    # so no (1,TL)->(Cpad,TL) broadcast is re-emitted inside the layer loop.
    # Tiles hold whole sequences, so the roll wrap-around at the tile edge is
    # also a sequence boundary and gets masked. For power-of-two L the modulo
    # lowers to a lane AND.
    pos = jax.lax.broadcasted_iota(jnp.int32, (Cpad, TL), 1) % L
    valid = {}
    for k in range(K):
        d = k - lp
        if d > 0:
            valid[d] = pos < (L - d)
        elif d < 0:
            valid[d] = pos >= (-d)

    for layer in range(n_layers):
        # Write the K taps as sublane slabs directly into the VMEM scratch:
        # no per-layer concatenate temporary, no extra copy.
        for k in range(K):
            d = k - lp                                        # tap k reads x[:, l + d]
            if d == 0:
                tap = h
            else:
                hk = pltpu.roll(h, shift=(-d) % TL, axis=1)   # XLU lane rotation
                tap = jnp.where(valid[d], hk, 0.0)            # zero 'same'-pad region
            stack_ref[pl.ds(k * Cpad, Cpad), :] = tap

        # One fused MXU matmul per layer. Default: bf16 operands (single MXU
        # pass), f32 accumulation; storage stays f32 everywhere.
        w = w_ref[layer].astype(matmul_dtype)                 # (Cpad, K*Cpad)
        x_stack = stack_ref[...].astype(matmul_dtype)         # (K*Cpad, TL)
        acc = jnp.dot(w, x_stack, preferred_element_type=jnp.float32)
        h = jnp.maximum(acc + b_ref[layer], 0.0)              # bias + ReLU

    o_ref[...] = h.astype(o_ref.dtype)


# --------------------------------------------------------------------------- #
# Parameter packing / sizing helpers
# --------------------------------------------------------------------------- #
def _pack_params(params, Cpad):
    """Pack per-layer (weight (Cout, Cin, K), bias (Cout,)) into two padded tensors.

    Returns W_pack (n_layers, Cpad, K*Cpad) and B_pack (n_layers, Cpad, 1), f32.
    Zero padding keeps fake channels exactly zero through the whole stack
    (ReLU(0 + 0) == 0), so padded lanes never pollute real outputs.
    """
    K = params[0][0].shape[-1]
    w_list, b_list = [], []
    for w, b in params:
        Cout, Cin, Kw = w.shape
        assert Kw == K, "all layers must share kernel_size"
        wt = jnp.transpose(w, (0, 2, 1))                               # (Cout, K, Cin)
        wt = jnp.pad(wt, ((0, Cpad - Cout), (0, 0), (0, Cpad - Cin)))  # (Cpad, K, Cpad)
        w_list.append(wt.reshape(Cpad, K * Cpad))
        b_list.append(jnp.pad(b, (0, Cpad - Cout)).reshape(Cpad, 1))
    return (jnp.stack(w_list).astype(jnp.float32),
            jnp.stack(b_list).astype(jnp.float32))


def _physical_vmem_bytes():
    try:
        return int(pltpu.get_tpu_info().vmem_capacity_bytes)
    except Exception:
        return 64 << 20   # v7x per-TC VMEM: the most conservative of v5e/v6e/v7x


def _vmem_limit_bytes(Cpad, TL, K, n_layers, physical):
    blk = Cpad * TL * 4
    params_bytes = 2 * n_layers * Cpad * (K * Cpad + 1) * 4
    # 2x double-buffered input + 2x output + K-slab tap scratch + ~6 blocks of
    # live temporaries (h, rolled tap, two hoisted masks, acc, cast) + params.
    need = (2 + 2 + K + 6) * blk + params_bytes + (2 << 20)
    return int(min(max(need, 32 << 20), int(physical * 0.9)))


def _choose_batch_block(B, L, Cpad, *, max_block_bytes,
                        target_block_bytes=512 << 10, itemsize=4):
    """Pick the per-grid-step batch block.

    Preference order:
      1. the block must fit the VMEM-derived byte cap (else raise: L-tiling needed),
      2. among blocks that reach the DMA-efficiency byte target, the SMALLEST
         (more grid steps -> software pipelining + both v7x TensorCores busy),
      3. for small problems that never reach the target, the largest block that
         still yields >= 2 grid steps.
    """
    cands = [d for d in range(1, B + 1)
             if B % d == 0 and (d == B or (d * L) % 128 == 0)]
    blk_bytes = lambda d: d * L * Cpad * itemsize
    fitting = [d for d in cands if blk_bytes(d) <= max_block_bytes]
    if not fitting:
        # TODO(synk): tile along L with a (K-1)//2 halo in the index_map for
        # sequences too long to take whole (needed for very long L on v7x).
        raise ValueError("no whole-sequence batch block fits the VMEM budget; "
                         "L-tiling with a halo is required")
    reaching = [d for d in fitting if blk_bytes(d) >= target_block_bytes]
    if reaching:
        return min(reaching)
    multi = [d for d in fitting if B // d >= 2]
    return max(multi) if multi else max(fitting)


# --------------------------------------------------------------------------- #
# Public wrapper
# --------------------------------------------------------------------------- #
def pre_convolutional_layer(x, params, *, batch_block=None,
                            matmul_dtype=jnp.bfloat16):
    """x: (B, L, C_in); params: list of (weight (Cout, Cin, K), bias (Cout,)).

    Mirrors PreConvolutionalLayer.forward (stride is fixed to 1, as required by
    PyTorch's padding='same'). matmul_dtype=jnp.bfloat16 (default) gives the
    single-pass-MXU fast path; pass jnp.float32 for bit-closer results.
    """
    B, L, Cin = x.shape
    n_layers = len(params)
    K = params[0][0].shape[-1]
    lp = (K - 1) // 2                                   # PyTorch 'same' left pad
    Cout_final = params[-1][0].shape[0]                 # crop to LAST layer's channels

    chans = ([Cin] + [w.shape[0] for w, _ in params] + [w.shape[1] for w, _ in params])
    Cpad = _round_up(max(chans), 8)
    w_pack, b_pack = _pack_params(params, Cpad)

    physical = _physical_vmem_bytes()
    if batch_block is None:
        max_blk = max(int(physical * 0.45) // (2 + 2 + K + 6), 1)
        batch_block = _choose_batch_block(B, L, Cpad, max_block_bytes=max_blk)
    assert B % batch_block == 0
    assert batch_block == B or (batch_block * L) % 128 == 0, (
        "block lane dim must be a multiple of 128 (or cover the full array)")
    TL = batch_block * L
    vmem_limit = _vmem_limit_bytes(Cpad, TL, K, n_layers, physical)

    # Layout plumbing (XLA side): channels -> sublanes, (batch, seq) -> lanes.
    # TODO(synk): in a full model, keep activations channel-major (Cpad, B*L)
    # across surrounding layers to avoid these two extra HBM read+write passes.
    x_p = jnp.pad(x.astype(jnp.float32), ((0, 0), (0, 0), (0, Cpad - Cin)))
    x_t = jnp.transpose(x_p, (2, 0, 1)).reshape(Cpad, B * L)

    kernel = functools.partial(_precnn_kernel, n_layers=n_layers, K=K, lp=lp,
                               L=L, matmul_dtype=matmul_dtype)

    out_t = pl.pallas_call(
        kernel,
        out_shape=jax.ShapeDtypeStruct((Cpad, B * L), x.dtype),
        grid_spec=pltpu.PrefetchScalarGridSpec(
            num_scalar_prefetch=0,
            grid=(B // batch_block,),
            in_specs=[
                pl.BlockSpec((Cpad, TL), lambda i: (0, i)),
                # Grid-invariant packed params: constant block index -> fetched
                # once (Pallas skips re-DMA when the block index is unchanged).
                pl.BlockSpec((n_layers, Cpad, K * Cpad), lambda i: (0, 0, 0)),
                pl.BlockSpec((n_layers, Cpad, 1), lambda i: (0, 0, 0)),
            ],
            out_specs=pl.BlockSpec((Cpad, TL), lambda i: (0, i)),
            scratch_shapes=[pltpu.VMEM((K * Cpad, TL), jnp.float32)],
        ),
        compiler_params=pltpu.CompilerParams(
            dimension_semantics=("parallel",),
            vmem_limit_bytes=vmem_limit),
    )(x_t, w_pack, b_pack)

    out = out_t.reshape(Cpad, B, L).transpose(1, 2, 0)
    return out[:, :, :Cout_final]


# --------------------------------------------------------------------------- #
# Pure-JAX reference + test
# --------------------------------------------------------------------------- #
def _ref_forward(x, params):
    """Pure-JAX reference mirroring the PyTorch forward (NCL convs, 'same' pad)."""
    h = jnp.transpose(x, (0, 2, 1))                     # (B, C, L)
    for w, b in params:
        K = w.shape[-1]
        lp = (K - 1) // 2
        h = jax.lax.conv_general_dilated(
            h, w, window_strides=(1,), padding=[(lp, K - 1 - lp)],
            dimension_numbers=("NCH", "OIH", "NCH"))
        h = jnp.maximum(h + b[None, :, None], 0.0)
    return jnp.transpose(h, (0, 2, 1))


def _init_conv_params(key, cout, cin, k):
    # Deterministic init mimicking PyTorch Conv1d default (uniform +/- 1/sqrt(cin*k)).
    kw, kb = jax.random.split(key)
    bound = 1.0 / jnp.sqrt(cin * k)
    w = jax.random.uniform(kw, (cout, cin, k), jnp.float32, -bound, bound)
    b = jax.random.uniform(kb, (cout,), jnp.float32, -bound, bound)
    return w, b


if __name__ == "__main__":
    B, L = 4, 128
    input_channels, hidden_channels, kernel_size, stride = 4, 8, 3, 1  # stride=1: 'same'

    key = jax.random.PRNGKey(0)
    kx, k1, k2, k3, k4 = jax.random.split(key, 5)
    x = jax.random.normal(kx, (B, L, input_channels), jnp.float32)

    params = [
        _init_conv_params(k1, hidden_channels, input_channels, kernel_size),
        _init_conv_params(k2, hidden_channels, hidden_channels, kernel_size),
        _init_conv_params(k3, hidden_channels, hidden_channels, kernel_size),
        _init_conv_params(k4, input_channels, hidden_channels, kernel_size),
    ]

    # Fast path (bf16 MXU operands, f32 accumulation/storage) and exact f32 path.
    out_fast = pre_convolutional_layer(x, params)                       # auto block -> grid=(2,)
    out_f32 = pre_convolutional_layer(x, params, matmul_dtype=jnp.float32)
    jax.block_until_ready((out_fast, out_f32))

    ref = _ref_forward(x, params)
    final_channels = params[-1][0].shape[0]
    assert out_fast.shape == (B, L, final_channels)
    assert out_f32.shape == (B, L, final_channels)
    assert jnp.allclose(out_f32, ref, atol=1e-5, rtol=1e-5), "f32 path mismatch vs reference"
    assert jnp.allclose(out_fast, ref, atol=5e-2, rtol=5e-2), "bf16 path mismatch vs reference"

    print("KERNEL_OK")
</pallas_src>

<mosaic_0001>
module attributes {stable_mosaic.version = 11 : i64} {
  func.func @_precnn_kernel(%arg0: i32, %arg1: memref<8x256xf32, #tpu.memory_space<vmem>>, %arg2: memref<4x8x24xf32, #tpu.memory_space<vmem>>, %arg3: memref<4x8x1xf32, #tpu.memory_space<vmem>>, %arg4: memref<8x256xf32, #tpu.memory_space<vmem>>, %arg5: memref<24x256xf32, #tpu.memory_space<vmem>>) attributes {dimension_semantics = [#tpu.dimension_semantics<parallel>], iteration_bounds = array<i64: 2>, scalar_prefetch = 0 : i64, scratch_operands = 1 : i64, tpu.core_type = #tpu.core_type<tc>, window_params = [{transform_indices = @transform_0, window_bounds = array<i64: 8, 256>}, {pipeline_mode = #tpu.pipeline_mode<synchronous>, transform_indices = @transform_1, window_bounds = array<i64: 4, 8, 24>}, {pipeline_mode = #tpu.pipeline_mode<synchronous>, transform_indices = @transform_2, window_bounds = array<i64: 4, 8, 1>}, {transform_indices = @transform_3, window_bounds = array<i64: 8, 256>}]} {
    %c0 = arith.constant 0 : index
    %c0_0 = arith.constant 0 : index
    %0 = vector.load %arg1[%c0, %c0_0] : memref<8x256xf32, #tpu.memory_space<vmem>>, vector<8x256xf32>
    %1 = tpu.iota {dimensions = array<i32: 1>} : vector<8x256xi32>
    %c128_i32 = arith.constant 128 : i32
    %c0_i32 = arith.constant 0 : i32
    %2 = arith.cmpi eq, %c128_i32, %c0_i32 : i32
    %c1_i32 = arith.constant 1 : i32
    %3 = arith.select %2, %c1_i32, %c128_i32 : i32
    %4 = vector.broadcast %3 : i32 to vector<8x256xi32>
    %5 = arith.remsi %1, %4 : vector<8x256xi32>
    %c0_i32_1 = arith.constant 0 : i32
    %6 = vector.broadcast %c0_i32_1 : i32 to vector<8x256xi32>
    %7 = arith.cmpi ne, %5, %6 : vector<8x256xi32>
    %c0_i32_2 = arith.constant 0 : i32
    %8 = vector.broadcast %c0_i32_2 : i32 to vector<8x256xi32>
    %9 = arith.cmpi slt, %5, %8 : vector<8x256xi32>
    %c0_i32_3 = arith.constant 0 : i32
    %10 = arith.cmpi slt, %3, %c0_i32_3 : i32
    %11 = vector.broadcast %10 : i1 to vector<8x256xi1>
    %12 = vector.broadcast %11 : vector<8x256xi1> to vector<8x256xi1>
    %13 = arith.xori %9, %12 : vector<8x256xi1>
    %14 = arith.andi %13, %7 : vector<8x256xi1>
    %15 = vector.broadcast %3 : i32 to vector<8x256xi32>
    %16 = arith.addi %5, %15 : vector<8x256xi32>
    %17 = arith.select %14, %16, %5 : vector<8x256xi1>, vector<8x256xi32>
    %c1_i32_4 = arith.constant 1 : i32
    %18 = vector.broadcast %c1_i32_4 : i32 to vector<8x256xi32>
    %19 = arith.cmpi sge, %17, %18 : vector<8x256xi32>
    %c127_i32 = arith.constant 127 : i32
    %20 = vector.broadcast %c127_i32 : i32 to vector<8x256xi32>
    %21 = arith.cmpi slt, %17, %20 : vector<8x256xi32>
    %c1_i32_5 = arith.constant 1 : i32
    %22 = tpu.dynamic_rotate %0 by %c1_i32_5 dim 1 : vector<8x256xf32>, i32 -> vector<8x256xf32>
    %cst = arith.constant 0.000000e+00 : f32
    %23 = vector.broadcast %cst : f32 to vector<8x256xf32>
    %24 = arith.select %19, %22, %23 : vector<8x256xi1>, vector<8x256xf32>
    %c0_6 = arith.constant 0 : index
    %c0_7 = arith.constant 0 : index
    %25 = vector.load %arg5[%c0_6, %c0_7] : memref<24x256xf32, #tpu.memory_space<vmem>>, vector<8x256xf32>
    tpu.vector_store %arg5[%c0_6, %c0_7], %24 {strides = array<i32>} : memref<24x256xf32, #tpu.memory_space<vmem>>, vector<8x256xf32>,
    %c8 = arith.constant 8 : index
    %c0_8 = arith.constant 0 : index
    %26 = vector.load %arg5[%c8, %c0_8] : memref<24x256xf32, #tpu.memory_space<vmem>>, vector<8x256xf32>
    tpu.vector_store %arg5[%c8, %c0_8], %0 {strides = array<i32>} : memref<24x256xf32, #tpu.memory_space<vmem>>, vector<8x256xf32>,
    %c255_i32 = arith.constant 255 : i32
    %27 = tpu.dynamic_rotate %0 by %c255_i32 dim 1 : vector<8x256xf32>, i32 -> vector<8x256xf32>
    %cst_9 = arith.constant 0.000000e+00 : f32
    %28 = vector.broadcast %cst_9 : f32 to vector<8x256xf32>
    %29 = arith.select %21, %27, %28 : vector<8x256xi1>, vector<8x256xf32>
    %c16 = arith.constant 16 : index
    %c0_10 = arith.constant 0 : index
    %30 = vector.load %arg5[%c16, %c0_10] : memref<24x256xf32, #tpu.memory_space<vmem>>, vector<8x256xf32>
    tpu.vector_store %arg5[%c16, %c0_10], %29 {strides = array<i32>} : memref<24x256xf32, #tpu.memory_space<vmem>>, vector<8x256xf32>,
    %c0_11 = arith.constant 0 : index
    %c0_12 = arith.constant 0 : index
    %c0_13 = arith.constant 0 : index
    %31 = vector.load %arg2[%c0_11, %c0_12, %c0_13] : memref<4x8x24xf32, #tpu.memory_space<vmem>>, vector<1x8x24xf32>
    %32 = vector.shape_cast %31 : vector<1x8x24xf32> to vector<8x24xf32>
    %33 = arith.truncf %32 : vector<8x24xf32> to vector<8x24xbf16>
    %c0_14 = arith.constant 0 : index
    %c0_15 = arith.constant 0 : index
    %34 = vector.load %arg5[%c0_14, %c0_15] : memref<24x256xf32, #tpu.memory_space<vmem>>, vector<24x256xf32>
    %35 = arith.truncf %34 : vector<24x256xf32> to vector<24x256xbf16>
    %cst_16 = arith.constant dense<0.000000e+00> : vector<8x256xf32>
    %36 = tpu.matmul %33, %35, %cst_16 {dimension_numbers = #tpu.dot_dimension_numbers<[1], [0], [0], [1], [0, 0, 1, 1], [], []>} : vector<8x24xbf16>, vector<24x256xbf16>, vector<8x256xf32> -> vector<8x256xf32>
    %c0_17 = arith.constant 0 : index
    %c0_18 = arith.constant 0 : index
    %c0_19 = arith.constant 0 : index
    %37 = vector.load %arg3[%c0_17, %c0_18, %c0_19] : memref<4x8x1xf32, #tpu.memory_space<vmem>>, vector<1x8x1xf32>
    %38 = vector.shape_cast %37 : vector<1x8x1xf32> to vector<8x1xf32>
    %39 = vector.broadcast %38 : vector<8x1xf32> to vector<8x256xf32>
    %40 = arith.addf %36, %39 : vector<8x256xf32>
    %cst_20 = arith.constant 0.000000e+00 : f32
    %41 = vector.broadcast %cst_20 : f32 to vector<8x256xf32>
    %42 = arith.maximumf %40, %41 : vector<8x256xf32>
    %c1_i32_21 = arith.constant 1 : i32
    %43 = tpu.dynamic_rotate %42 by %c1_i32_21 dim 1 : vector<8x256xf32>, i32 -> vector<8x256xf32>
    %cst_22 = arith.constant 0.000000e+00 : f32
    %44 = vector.broadcast %cst_22 : f32 to vector<8x256xf32>
    %45 = arith.select %19, %43, %44 : vector<8x256xi1>, vector<8x256xf32>
    %c0_23 = arith.constant 0 : index
    %c0_24 = arith.constant 0 : index
    %46 = vector.load %arg5[%c0_23, %c0_24] : memref<24x256xf32, #tpu.memory_space<vmem>>, vector<8x256xf32>
    tpu.vector_store %arg5[%c0_23, %c0_24], %45 {strides = array<i32>} : memref<24x256xf32, #tpu.memory_space<vmem>>, vector<8x256xf32>,
    %c8_25 = arith.constant 8 : index
    %c0_26 = arith.constant 0 : index
    %47 = vector.load %arg5[%c8_25, %c0_26] : memref<24x256xf32, #tpu.memory_space<vmem>>, vector<8x256xf32>
    tpu.vector_store %arg5[%c8_25, %c0_26], %42 {strides = array<i32>} : memref<24x256xf32, #tpu.memory_space<vmem>>, vector<8x256xf32>,
    %c255_i32_27 = arith.constant 255 : i32
    %48 = tpu.dynamic_rotate %42 by %c255_i32_27 dim 1 : vector<8x256xf32>, i32 -> vector<8x256xf32>
    %cst_28 = arith.constant 0.000000e+00 : f32
    %49 = vector.broadcast %cst_28 : f32 to vector<8x256xf32>
    %50 = arith.select %21, %48, %49 : vector<8x256xi1>, vector<8x256xf32>
    %c16_29 = arith.constant 16 : index
    %c0_30 = arith.constant 0 : index
    %51 = vector.load %arg5[%c16_29, %c0_30] : memref<24x256xf32, #tpu.memory_space<vmem>>, vector<8x256xf32>
    tpu.vector_store %arg5[%c16_29, %c0_30], %50 {strides = array<i32>} : memref<24x256xf32, #tpu.memory_space<vmem>>, vector<8x256xf32>,
    %c1 = arith.constant 1 : index
    %c0_31 = arith.constant 0 : index
    %c0_32 = arith.constant 0 : index
    %52 = vector.load %arg2[%c1, %c0_31, %c0_32] : memref<4x8x24xf32, #tpu.memory_space<vmem>>, vector<1x8x24xf32>
    %53 = vector.shape_cast %52 : vector<1x8x24xf32> to vector<8x24xf32>
    %54 = arith.truncf %53 : vector<8x24xf32> to vector<8x24xbf16>
    %c0_33 = arith.constant 0 : index
    %c0_34 = arith.constant 0 : index
    %55 = vector.load %arg5[%c0_33, %c0_34] : memref<24x256xf32, #tpu.memory_space<vmem>>, vector<24x256xf32>
    %56 = arith.truncf %55 : vector<24x256xf32> to vector<24x256xbf16>
    %cst_35 = arith.constant dense<0.000000e+00> : vector<8x256xf32>
    %57 = tpu.matmul %54, %56, %cst_35 {dimension_numbers = #tpu.dot_dimension_numbers<[1], [0], [0], [1], [0, 0, 1, 1], [], []>} : vector<8x24xbf16>, vector<24x256xbf16>, vector<8x256xf32> -> vector<8x256xf32>
    %c1_36 = arith.constant 1 : index
    %c0_37 = arith.constant 0 : index
    %c0_38 = arith.constant 0 : index
    %58 = vector.load %arg3[%c1_36, %c0_37, %c0_38] : memref<4x8x1xf32, #tpu.memory_space<vmem>>, vector<1x8x1xf32>
    %59 = vector.shape_cast %58 : vector<1x8x1xf32> to vector<8x1xf32>
    %60 = vector.broadcast %59 : vector<8x1xf32> to vector<8x256xf32>
    %61 = arith.addf %57, %60 : vector<8x256xf32>
    %cst_39 = arith.constant 0.000000e+00 : f32
    %62 = vector.broadcast %cst_39 : f32 to vector<8x256xf32>
    %63 = arith.maximumf %61, %62 : vector<8x256xf32>
    %c1_i32_40 = arith.constant 1 : i32
    %64 = tpu.dynamic_rotate %63 by %c1_i32_40 dim 1 : vector<8x256xf32>, i32 -> vector<8x256xf32>
    %cst_41 = arith.constant 0.000000e+00 : f32
    %65 = vector.broadcast %cst_41 : f32 to vector<8x256xf32>
    %66 = arith.select %19, %64, %65 : vector<8x256xi1>, vector<8x256xf32>
    %c0_42 = arith.constant 0 : index
    %c0_43 = arith.constant 0 : index
    %67 = vector.load %arg5[%c0_42, %c0_43] : memref<24x256xf32, #tpu.memory_space<vmem>>, vector<8x256xf32>
    tpu.vector_store %arg5[%c0_42, %c0_43], %66 {strides = array<i32>} : memref<24x256xf32, #tpu.memory_space<vmem>>, vector<8x256xf32>,
    %c8_44 = arith.constant 8 : index
    %c0_45 = arith.constant 0 : index
    %68 = vector.load %arg5[%c8_44, %c0_45] : memref<24x256xf32, #tpu.memory_space<vmem>>, vector<8x256xf32>
    tpu.vector_store %arg5[%c8_44, %c0_45], %63 {strides = array<i32>} : memref<24x256xf32, #tpu.memory_space<vmem>>, vector<8x256xf32>,
    %c255_i32_46 = arith.constant 255 : i32
    %69 = tpu.dynamic_rotate %63 by %c255_i32_46 dim 1 : vector<8x256xf32>, i32 -> vector<8x256xf32>
    %cst_47 = arith.constant 0.000000e+00 : f32
    %70 = vector.broadcast %cst_47 : f32 to vector<8x256xf32>
    %71 = arith.select %21, %69, %70 : vector<8x256xi1>, vector<8x256xf32>
    %c16_48 = arith.constant 16 : index
    %c0_49 = arith.constant 0 : index
    %72 = vector.load %arg5[%c16_48, %c0_49] : memref<24x256xf32, #tpu.memory_space<vmem>>, vector<8x256xf32>
    tpu.vector_store %arg5[%c16_48, %c0_49], %71 {strides = array<i32>} : memref<24x256xf32, #tpu.memory_space<vmem>>, vector<8x256xf32>,
    %c2 = arith.constant 2 : index
    %c0_50 = arith.constant 0 : index
    %c0_51 = arith.constant 0 : index
    %73 = vector.load %arg2[%c2, %c0_50, %c0_51] : memref<4x8x24xf32, #tpu.memory_space<vmem>>, vector<1x8x24xf32>
    %74 = vector.shape_cast %73 : vector<1x8x24xf32> to vector<8x24xf32>
    %75 = arith.truncf %74 : vector<8x24xf32> to vector<8x24xbf16>
    %c0_52 = arith.constant 0 : index
    %c0_53 = arith.constant 0 : index
    %76 = vector.load %arg5[%c0_52, %c0_53] : memref<24x256xf32, #tpu.memory_space<vmem>>, vector<24x256xf32>
    %77 = arith.truncf %76 : vector<24x256xf32> to vector<24x256xbf16>
    %cst_54 = arith.constant dense<0.000000e+00> : vector<8x256xf32>
    %78 = tpu.matmul %75, %77, %cst_54 {dimension_numbers = #tpu.dot_dimension_numbers<[1], [0], [0], [1], [0, 0, 1, 1], [], []>} : vector<8x24xbf16>, vector<24x256xbf16>, vector<8x256xf32> -> vector<8x256xf32>
    %c2_55 = arith.constant 2 : index
    %c0_56 = arith.constant 0 : index
    %c0_57 = arith.constant 0 : index
    %79 = vector.load %arg3[%c2_55, %c0_56, %c0_57] : memref<4x8x1xf32, #tpu.memory_space<vmem>>, vector<1x8x1xf32>
    %80 = vector.shape_cast %79 : vector<1x8x1xf32> to vector<8x1xf32>
    %81 = vector.broadcast %80 : vector<8x1xf32> to vector<8x256xf32>
    %82 = arith.addf %78, %81 : vector<8x256xf32>
    %cst_58 = arith.constant 0.000000e+00 : f32
    %83 = vector.broadcast %cst_58 : f32 to vector<8x256xf32>
    %84 = arith.maximumf %82, %83 : vector<8x256xf32>
    %c1_i32_59 = arith.constant 1 : i32
    %85 = tpu.dynamic_rotate %84 by %c1_i32_59 dim 1 : vector<8x256xf32>, i32 -> vector<8x256xf32>
    %cst_60 = arith.constant 0.000000e+00 : f32
    %86 = vector.broadcast %cst_60 : f32 to vector<8x256xf32>
    %87 = arith.select %19, %85, %86 : vector<8x256xi1>, vector<8x256xf32>
    %c0_61 = arith.constant 0 : index
    %c0_62 = arith.constant 0 : index
    %88 = vector.load %arg5[%c0_61, %c0_62] : memref<24x256xf32, #tpu.memory_space<vmem>>, vector<8x256xf32>
    tpu.vector_store %arg5[%c0_61, %c0_62], %87 {strides = array<i32>} : memref<24x256xf32, #tpu.memory_space<vmem>>, vector<8x256xf32>,
    %c8_63 = arith.constant 8 : index
    %c0_64 = arith.constant 0 : index
    %89 = vector.load %arg5[%c8_63, %c0_64] : memref<24x256xf32, #tpu.memory_space<vmem>>, vector<8x256xf32>
    tpu.vector_store %arg5[%c8_63, %c0_64], %84 {strides = array<i32>} : memref<24x256xf32, #tpu.memory_space<vmem>>, vector<8x256xf32>,
    %c255_i32_65 = arith.constant 255 : i32
    %90 = tpu.dynamic_rotate %84 by %c255_i32_65 dim 1 : vector<8x256xf32>, i32 -> vector<8x256xf32>
    %cst_66 = arith.constant 0.000000e+00 : f32
    %91 = vector.broadcast %cst_66 : f32 to vector<8x256xf32>
    %92 = arith.select %21, %90, %91 : vector<8x256xi1>, vector<8x256xf32>
    %c16_67 = arith.constant 16 : index
    %c0_68 = arith.constant 0 : index
    %93 = vector.load %arg5[%c16_67, %c0_68] : memref<24x256xf32, #tpu.memory_space<vmem>>, vector<8x256xf32>
    tpu.vector_store %arg5[%c16_67, %c0_68], %92 {strides = array<i32>} : memref<24x256xf32, #tpu.memory_space<vmem>>, vector<8x256xf32>,
    %c3 = arith.constant 3 : index
    %c0_69 = arith.constant 0 : index
    %c0_70 = arith.constant 0 : index
    %94 = vector.load %arg2[%c3, %c0_69, %c0_70] : memref<4x8x24xf32, #tpu.memory_space<vmem>>, vector<1x8x24xf32>
    %95 = vector.shape_cast %94 : vector<1x8x24xf32> to vector<8x24xf32>
    %96 = arith.truncf %95 : vector<8x24xf32> to vector<8x24xbf16>
    %c0_71 = arith.constant 0 : index
    %c0_72 = arith.constant 0 : index
    %97 = vector.load %arg5[%c0_71, %c0_72] : memref<24x256xf32, #tpu.memory_space<vmem>>, vector<24x256xf32>
    %98 = arith.truncf %97 : vector<24x256xf32> to vector<24x256xbf16>
    %cst_73 = arith.constant dense<0.000000e+00> : vector<8x256xf32>
    %99 = tpu.matmul %96, %98, %cst_73 {dimension_numbers = #tpu.dot_dimension_numbers<[1], [0], [0], [1], [0, 0, 1, 1], [], []>} : vector<8x24xbf16>, vector<24x256xbf16>, vector<8x256xf32> -> vector<8x256xf32>
    %c3_74 = arith.constant 3 : index
    %c0_75 = arith.constant 0 : index
    %c0_76 = arith.constant 0 : index
    %100 = vector.load %arg3[%c3_74, %c0_75, %c0_76] : memref<4x8x1xf32, #tpu.memory_space<vmem>>, vector<1x8x1xf32>
    %101 = vector.shape_cast %100 : vector<1x8x1xf32> to vector<8x1xf32>
    %102 = vector.broadcast %101 : vector<8x1xf32> to vector<8x256xf32>
    %103 = arith.addf %99, %102 : vector<8x256xf32>
    %cst_77 = arith.constant 0.000000e+00 : f32
    %104 = vector.broadcast %cst_77 : f32 to vector<8x256xf32>
    %105 = arith.maximumf %103, %104 : vector<8x256xf32>
    %c0_78 = arith.constant 0 : index
    %c0_79 = arith.constant 0 : index
    %106 = vector.load %arg4[%c0_78, %c0_79] : memref<8x256xf32, #tpu.memory_space<vmem>>, vector<8x256xf32>
    tpu.vector_store %arg4[%c0_78, %c0_79], %105 {strides = array<i32>} : memref<8x256xf32, #tpu.memory_space<vmem>>, vector<8x256xf32>,
    return
  }
  func.func @transform_0(%arg0: i32) -> (i32, i32) {
    %c0_i32 = arith.constant 0 : i32
    %c0_i32_0 = arith.constant 0 : i32
    return %c0_i32, %arg0 : i32, i32
  }
  func.func @transform_1(%arg0: i32) -> (i32, i32, i32) {
    %c0_i32 = arith.constant 0 : i32
    %c0_i32_0 = arith.constant 0 : i32
    %c0_i32_1 = arith.constant 0 : i32
    %c0_i32_2 = arith.constant 0 : i32
    return %c0_i32, %c0_i32_0, %c0_i32_1 : i32, i32, i32
  }
  func.func @transform_2(%arg0: i32) -> (i32, i32, i32) {
    %c0_i32 = arith.constant 0 : i32
    %c0_i32_0 = arith.constant 0 : i32
    %c0_i32_1 = arith.constant 0 : i32
    %c0_i32_2 = arith.constant 0 : i32
    return %c0_i32, %c0_i32_0, %c0_i32_1 : i32, i32, i32
  }
  func.func @transform_3(%arg0: i32) -> (i32, i32) {
    %c0_i32 = arith.constant 0 : i32
    %c0_i32_0 = arith.constant 0 : i32
    return %c0_i32, %arg0 : i32, i32
  }
}

</mosaic_0001>

<bundles_post_ra>
// kernel: tpu_custom_call.1
= control target key start
LH: loop header
LB: loop body
LE: loop exit
PB: predicated region body
PF: predicated region fallthrough
CT: control target
= control target key end

     0   :  { %8 = vsyncpa [#allocation4], 0  ;;  %s1117_s0 = inlined_call_operand.vmem [shape: f32[8,512], index: 0, kind: input, shape index: {}]   ;;  %s1118_s1 = inlined_call_operand.hbm [shape: f32[4,8,24], index: 1, kind: input, shape index: {}]   ;;  %s1119_s2 = inlined_call_operand.vmem [shape: f32[4,8,1], index: 2, kind: input, shape index: {}]   ;;  %s1120_s3 = inlined_call_operand.hbm [shape: f32[8,512], index: 3, kind: output, shape index: {}]  }
   0x1   :  { %9 = vsyncpa [#allocation5], 0 }
   0x2   :  { %11 = vsyncpa [#allocation5 + $0x1], 0  ;;  %s905_s12 = smov 0   ;;  %s907_s13 = smov 0  }
   0x3   :  { %s909_s14 = smov 0   ;;  %s911_s15 = smov 0  }
   0x4 LB: > { %s926_s16 = sadd.s32 4294967295, %s876_s15   ;;  %s631_s17 = sadd.s32 4294967294, %s876_s15   ;;  %s876_s15 = sphi %s911_s15, %s1132_s15   ;;  %s872_s14 = sphi %s909_s14, %s1131_s14   ;;  %s868_s13 = sphi %s907_s13, %s1130_s13   ;;  %s864_s12 = sphi %s905_s12, %s1129_s12  }
   0x5   : > { %s930_s18 = sadd.s32 1, %s876_s15   ;;  %s92_s19 = sadd.s32 1, %s872_s14 }
   0x6   : > { %s89_s20 = ssub.s32 %s876_s15, %s930_s18  ;;  %p102_p0 = scmp.ne.s32.totalorder %s872_s14, %s868_s13 }
   0x7   : > { %p90_p1 = scmp.eq.s32.totalorder %s89_s20, 0  ;;  %p103_p2 = scmp.eq.s32.totalorder %s926_s16, 1 }
   0x8   : > { %p108_p3 = scmp.ne.s32.totalorder %s868_s13, %s864_s12  ;;  %p109_p4 = scmp.eq.s32.totalorder %s631_s17, 1 }
   0x9   : > { %s941_s21 = scalar_select %p90_p1, %s872_s14, %s92_s19  }
   0xa   : > { %p943_p5 = por %p103_p2, %p102_p0  ;;  %p947_p6 = por %p109_p4, %p108_p3 }
   0xb   : > { %p632_p7 = scmp.ge.s32.totalorder %s876_s15, 1  ;;  %p116_p8 = scmp.lt.s32.totalorder %s876_s15, 3 }
   0xc   : > { %p695_p9 = scmp.eq.s32.totalorder %s926_s16, 0  ;;  %s127_s26 = sshll.u32 %s1118_s1, 4  ;;  %s128_s26 = int_to_ptr.hbm [resolvable:$true] %s127_s26 }
   0xd   : > { %p117_p10 = pnand %p632_p7, %p116_p8  ;;  %s878_s27 = smov [#allocation3]  }
   0xe   : > { %s129_s28 = sshll.u32 %s878_s27, 4  ;;  %s879_s29 = smov 128   ;;  %s130_s28 = int_to_ptr.vmem [resolvable:$true] %s129_s28 }
   0xf   : > { %p687_p11 = pneg %p117_p10  ;;  %s880_s30 = smov 8  }
  0x10   : > { %157 = sbr.rel (%p117_p10) target bundleno = 1091 (0x443), region = 32 }
  0x11   : > { %p688_p12 = pnand %p695_p9, %p687_p11 }
  0x13   : > { %690 = dma.hbm_to_vmem [thread:$0]  (!%p688_p12), %s128_s26, 512, %s130_s28, [#allocation4], %s879_s29, %s879_s29, %s880_s30  }
  0x15   : > { %855 = dma.done.wait (%p695_p9), [#allocation4], 512  }
  0x16   : > { %857 = vsyncadd (%p695_p9), [#allocation4], 4294966784  ;;  %s638_s4 = sshll.u32 %s926_s16, 1  ;;  %s881_s9 = smov 127   ;;  %v192_v3 = vlaneseq  ;;  %v259_v4 = vld [vmem:[%s1119_s2] sm:$0xff]  ;;  %v883_v5 = vmov 0  }
  0x17   : > { %p183_p13 = scmp.lt.s32.totalorder %s638_s4, 3  ;;  %s882_s10 = smov 1   ;;  %747 = vset.pattern.permute.xlu1 %v883_v5  ;;  %758 = vset.pattern.permute.xlu2 %v883_v5  ;;  %vm269_vm2 = vcmask 1043456   ;;  %vm884_vm6 = vmmov 1   ;;  %v247_v25 = vld [vmem:[#allocation3] sm:$0xff]  ;;  %vm265_vm9 = vcmask 195584  }
  0x18   : > { %262 = vperm.xlu1 %747, %v259_v4   ;;  %779 = vset.pattern.permute.xlu0 %v883_v5  ;;  %v972_v6 = vand.u32 127, %v192_v3  ;;  %v248_v31 = vpack.c.bf16 %v247_v25, %v247_v25  ;;  %v642_v42 = vld [vmem:[%s1119_s2 + $0x8] sm:$0xff]  ;;  %v645_v43 = vld [vmem:[%s1119_s2 + $0x10] sm:$0xff]  ;;  %v648_v44 = vld [vmem:[%s1119_s2 + $0x18] sm:$0xff]  ;;  %s179_s28 = sand.u32 1, %s868_s13   ;;  %s656_s30 = sshll.u32 %s926_s16, 4 }
  0x19   : > { %s1134_s4 = smov (!%p183_p13, %s638_s4), 3  ;;  %v327_v61 = vld [vmem:[#allocation3 + $0x8] sm:$0xff]  ;;  %s637_s29 = sshll.u32 %s179_s28, 4 }
  0x1a   : > { %s639_s5 = sshll.u32 %s1134_s4, 3  ;;  %v194_v7 = vadd.s32 128, %v972_v6  ;;  %vm221_vm0 = vcmp.lt.s32.totalorder %v972_v6, 127  ;;  %vm219_vm3 = vcmp.ge.s32.totalorder %v972_v6, 1  ;;  %vm227_vm4 = vcmp.lt.s32.totalorder %v972_v6, 1  ;;  %s555_s6 = scalar_lea.hbm %s1120_s3, %s656_s30 }
  0x1b   : > { %s186_s8 = scalar_lea.vmem %s1117_s0, %s639_s5  ;;  %vm992_vm7 = vmpackc.low %vm884_vm6, %vm219_vm3  ;;  %s181_s7 = scalar_lea.vmem [#allocation6], %s637_s29 }
  0x1c   : > { %v190_v0 = vld [vmem:[%s186_s8] sm:$0xff]  ;;  %v191_v1 = vld [vmem:[%s186_s8 + $0x8] sm:$0xff]  ;;  %v206_v8 = vand.u32 127, %v194_v7  ;;  %s557_s8 = sshll.u32 %s181_s7, 4  ;;  %s544_s16 = scalar_lea.sflag [#allocation5], %s179_s28  ;;  %s558_s8 = int_to_ptr.vmem [resolvable:$true] %s557_s8 }
  0x1d   : > { %v737_v2 = vpack.i.bf16 %v191_v1, %v190_v0  ;;  %s830_s20 = scalar_lea.hbm %s1120_s3, 32 }
  0x1e   : > { %vm976_vm1 = vcmp.lt.s32.totalorder %v206_v8, 127  ;;  %vm220_vm5 = vcmp.ge.s32.totalorder %v206_v8, 1 }
  0x1f   : > { %738 = vrot.lane.b32.xlu0 %v737_v2, %s881_s9  ;;  %vm1000_vm8 = vmpackc.low %vm884_vm6, %vm220_vm5 }
  0x27   : > { %743 = vrot.lane.b32.xlu0 %v737_v2, %s882_s10 }
  0x8a   : > { %v263_v32 = vpop.permute.xlu1 %262 }
  0x91   : > { %v739_v9 = vpop.permute.xlu0 %738 }
  0x92   : > { %v741_v10 = vunpack.i.h.bf16 %v739_v9  ;;  %v740_v11 = vunpack.i.l.bf16 %v739_v9 }
  0x94   : > { %v241_v13 = vsel %vm221_vm0, %v740_v11, %v741_v10  ;;  %v242_v14 = vsel %vm221_vm0, %v741_v10, %v740_v11 }
  0x95   : > { %v243_v15 = vsel %vm221_vm0, %v241_v13, 0.0  ;;  %v244_v16 = vsel %vm976_vm1, %v242_v14, 0.0 }
  0x96   : > { %v257_v17 = vpack.c.bf16 %v243_v15, %v243_v15  ;;  %v258_v18 = vpack.c.bf16 %v244_v16, %v244_v16 }
  0x98   : > { %v271_v19 = vsel %vm269_vm2, %v257_v17, 0  ;;  %v274_v20 = vsel %vm269_vm2, %v258_v18, 0 }
  0x99   : > { %v744_v21 = vpop.permute.xlu0 %743  ;;  %282 = vmatpush.bf16.msra.mxu0 %v271_v19  ;;  %295 = vmatpush.bf16.msra.mxu1 %v274_v20 }
  0x9a   : > { %v746_v22 = vunpack.i.h.bf16 %v744_v21  ;;  %v745_v23 = vunpack.i.l.bf16 %v744_v21 }
  0x9c   : > { %v229_v26 = vsel %vm227_vm4, %v746_v22, %v745_v23  ;;  %v228_v27 = vsel %vm227_vm4, %v745_v23, %v746_v22 }
  0x9d   : > { %v658_v29 = vpack.c.bf16 %v190_v0, %v229_v26  ;;  %v661_v30 = vpack.c.bf16 %v191_v1, %v228_v27  ;;  %v328_v0 = vpack.c.bf16 %v327_v61, %v327_v61  ;;  %v485_v61 = vld [vmem:[#allocation3 + $0x18] sm:$0xff] }
  0x9f   : > { %659 = vmatpush.bf16.msk.msra.mxu0 %vm992_vm7, %v658_v29  ;;  %662 = vmatpush.bf16.msk.msra.mxu1 %vm1000_vm8, %v661_v30 }
  0xa2   : > { %640 = vmatmul.msk.bf16.vlgmr.msra.gmra.mxu0 %vm265_vm9, %v248_v31  ;;  %641 = vmatmul.msk.bf16.vlgmr.msra.gmra.mxu1 %vm265_vm9, %v248_v31  ;;  %v406_v31 = vld [vmem:[#allocation3 + $0x10] sm:$0xff] }
 0x11f   : > { %v285_v33 = vpop.f32.mrf.mxu0  ;;  %v298_v34 = vpop.f32.mrf.mxu1 }
 0x120   : > { %v286_v35 = vadd.f32 %v285_v33, %v263_v32  ;;  %v299_v36 = vadd.f32 %v298_v34, %v263_v32  ;;  %v407_v34 = vpack.c.bf16 %v406_v31, %v406_v31 }
 0x122   : > { %v302_v37 = vmax.f32 %v286_v35, 0.0  ;;  %v303_v38 = vmax.f32 %v299_v36, 0.0 }
 0x124   : > { %v753_v39 = vpack.i.bf16 %v303_v38, %v302_v37 }
 0x126   : > { %754 = vrot.lane.b32.xlu2 %v753_v39, %s882_s10  ;;  %749 = vrot.lane.b32.xlu1 %v753_v39, %s881_s9 }
 0x127   : > { %v287_v40 = vpop.f32.mrf.mxu0  ;;  %v300_v41 = vpop.f32.mrf.mxu1 }
 0x12e   : > { %343 = vperm.xlu2 %758, %v642_v42  }
 0x136   : > { %422 = vperm.xlu2 %758, %v645_v43  }
 0x13e   : > { %501 = vperm.xlu2 %758, %v648_v44  }
 0x180   : > { %v755_v45 = vpop.permute.xlu2 %754 }
 0x181   : > { %v757_v49 = vunpack.i.h.bf16 %v755_v45  ;;  %v756_v50 = vunpack.i.l.bf16 %v755_v45 }
 0x183   : > { %v309_v59 = vsel %vm227_vm4, %v757_v49, %v756_v50  ;;  %v308_v60 = vsel %vm227_vm4, %v756_v50, %v757_v49 }
 0x184   : > { %v664_v62 = vpack.c.bf16 %v302_v37, %v309_v59  ;;  %v667_v63 = vpack.c.bf16 %v303_v38, %v308_v60 }
 0x188   : > { %v344_v1 = vpop.permute.xlu2 %343 }
 0x190   : > { %v423_v35 = vpop.permute.xlu2 %422 }
 0x198   : > { %v750_v46 = vpop.permute.xlu1 %749  ;;  %v502_v6 = vpop.permute.xlu2 %501 }
 0x199   : > { %v752_v47 = vunpack.i.h.bf16 %v750_v46  ;;  %v751_v48 = vunpack.i.l.bf16 %v750_v46 }
 0x19b   : > { %v320_v51 = vsel %vm221_vm0, %v751_v48, %v752_v47  ;;  %v321_v52 = vsel %vm221_vm0, %v752_v47, %v751_v48 }
 0x19c   : > { %v322_v53 = vsel %vm221_vm0, %v320_v51, 0.0  ;;  %v323_v54 = vsel %vm976_vm1, %v321_v52, 0.0 }
 0x19d   : > { %v337_v55 = vpack.c.bf16 %v322_v53, %v322_v53  ;;  %v338_v56 = vpack.c.bf16 %v323_v54, %v323_v54 }
 0x19f   : > { %v350_v57 = vsel %vm269_vm2, %v337_v55, 0  ;;  %v353_v58 = vsel %vm269_vm2, %v338_v56, 0 }
 0x1a0   : > { %361 = vmatpush.bf16.msra.mxu2 %v350_v57  ;;  %374 = vmatpush.bf16.msra.mxu3 %v353_v58 }
 0x1a4   : > { %665 = vmatpush.bf16.msk.msra.mxu2 %vm992_vm7, %v664_v62  ;;  %668 = vmatpush.bf16.msk.msra.mxu3 %vm1000_vm8, %v667_v63  ;;  %v486_v63 = vpack.c.bf16 %v485_v61, %v485_v61 }
 0x1a7   : > { %643 = vmatmul.msk.bf16.vlgmr.msra.gmra.mxu2 %vm265_vm9, %v328_v0  ;;  %644 = vmatmul.msk.bf16.vlgmr.msra.gmra.mxu3 %vm265_vm9, %v328_v0 }
 0x22a   : > { %v364_v2 = vpop.f32.mrf.mxu2  ;;  %v377_v3 = vpop.f32.mrf.mxu3 }
 0x22b   : > { %v365_v4 = vadd.f32 %v364_v2, %v344_v1  ;;  %v378_v5 = vadd.f32 %v377_v3, %v344_v1 }
 0x22d   : > { %v381_v7 = vmax.f32 %v365_v4, 0.0  ;;  %v382_v8 = vmax.f32 %v378_v5, 0.0 }
 0x22f   : > { %v764_v9 = vpack.i.bf16 %v382_v8, %v381_v7 }
 0x231   : > { %765 = vrot.lane.b32.xlu1 %v764_v9, %s882_s10  ;;  %760 = vrot.lane.b32.xlu0 %v764_v9, %s881_s9 }
 0x232   : > { %v366_v10 = vpop.f32.mrf.mxu2  ;;  %v379_v11 = vpop.f32.mrf.mxu3 }
 0x2a3   : > { %v766_v13 = vpop.permute.xlu1 %765  ;;  %v761_v14 = vpop.permute.xlu0 %760 }
 0x2a4   : > { %v763_v15 = vunpack.i.h.bf16 %v761_v14  ;;  %v762_v16 = vunpack.i.l.bf16 %v761_v14  ;;  %v768_v17 = vunpack.i.h.bf16 %v766_v13  ;;  %v767_v18 = vunpack.i.l.bf16 %v766_v13 }
 0x2a6   : > { %v399_v19 = vsel %vm221_vm0, %v762_v16, %v763_v15  ;;  %v400_v20 = vsel %vm221_vm0, %v763_v15, %v762_v16  ;;  %v388_v29 = vsel %vm227_vm4, %v768_v17, %v767_v18  ;;  %v387_v30 = vsel %vm227_vm4, %v767_v18, %v768_v17 }
 0x2a7   : > { %v401_v21 = vsel %vm221_vm0, %v399_v19, 0.0  ;;  %v402_v22 = vsel %vm976_vm1, %v400_v20, 0.0  ;;  %v670_v32 = vpack.c.bf16 %v381_v7, %v388_v29  ;;  %v673_v33 = vpack.c.bf16 %v382_v8, %v387_v30 }
 0x2a8   : > { %v416_v23 = vpack.c.bf16 %v401_v21, %v401_v21  ;;  %v417_v25 = vpack.c.bf16 %v402_v22, %v402_v22 }
 0x2aa   : > { %v429_v26 = vsel %vm269_vm2, %v416_v23, 0  ;;  %v432_v27 = vsel %vm269_vm2, %v417_v25, 0 }
 0x2ab   : > { %440 = vmatpush.bf16.msrb.mxu0 %v429_v26  ;;  %453 = vmatpush.bf16.msrb.mxu1 %v432_v27 }
 0x2af   : > { %671 = vmatpush.bf16.msk.msrb.mxu0 %vm992_vm7, %v670_v32  ;;  %674 = vmatpush.bf16.msk.msrb.mxu1 %vm1000_vm8, %v673_v33 }
 0x2b2   : > { %646 = vmatmul.msk.bf16.vlgmr.msrb.gmra.mxu0 %vm265_vm9, %v407_v34  ;;  %647 = vmatmul.msk.bf16.vlgmr.msrb.gmra.mxu1 %vm265_vm9, %v407_v34 }
 0x32f   : > { %v443_v36 = vpop.f32.mrf.mxu0  ;;  %v456_v37 = vpop.f32.mrf.mxu1 }
 0x330   : > { %v444_v38 = vadd.f32 %v443_v36, %v423_v35  ;;  %v457_v39 = vadd.f32 %v456_v37, %v423_v35 }
 0x332   : > { %v460_v40 = vmax.f32 %v444_v38, 0.0  ;;  %v461_v41 = vmax.f32 %v457_v39, 0.0 }
 0x334   : > { %v774_v42 = vpack.i.bf16 %v461_v41, %v460_v40 }
 0x336   : > { %775 = vrot.lane.b32.xlu1 %v774_v42, %s882_s10  ;;  %770 = vrot.lane.b32.xlu0 %v774_v42, %s881_s9  ;;  %s559_s9 = sshll.u32 %s555_s6, 4  ;;  %s560_s9 = int_to_ptr.hbm [resolvable:$true] %s559_s9 }
 0x337   : > { %v445_v43 = vpop.f32.mrf.mxu0  ;;  %v458_v44 = vpop.f32.mrf.mxu1  ;;  %s824_s10 = sshra.s32 %s560_s9, 4  ;;  %s825_s10 = int_to_ptr.hbm [resolvable:$true] %s824_s10 }
 0x338   : > { %s826_s11 = scalar_lea.hbm %s825_s10, 16  ;;  %p831_p3 = scmp.lt.s32.totalorder %s825_s10, %s1120_s3 }
 0x339   : > { %p827_p0 = scmp.ne.s32.totalorder %s825_s10, %s826_s11  ;;  %p832_p4 = scmp.lt.s32.totalorder %s830_s20, %s826_s11 }
 0x33b   : > { %p828_p1 = pnand %p827_p0, %p943_p5  ;;  %p833_p7 = por %p832_p4, %p831_p3 }
 0x33d   : > { %p829_p2 = pneg %p828_p1 }
 0x33f   : > { %p834_p8 = pnand %p833_p7, %p829_p2 }
 0x3a8   : > { %v776_v45 = vpop.permute.xlu1 %775  ;;  %v771_v46 = vpop.permute.xlu0 %770 }
 0x3a9   : > { %v773_v47 = vunpack.i.h.bf16 %v771_v46  ;;  %v772_v48 = vunpack.i.l.bf16 %v771_v46  ;;  %v778_v49 = vunpack.i.h.bf16 %v776_v45  ;;  %v777_v50 = vunpack.i.l.bf16 %v776_v45 }
 0x3ab   : > { %v478_v51 = vsel %vm221_vm0, %v772_v48, %v773_v47  ;;  %v479_v52 = vsel %vm221_vm0, %v773_v47, %v772_v48  ;;  %v467_v59 = vsel %vm227_vm4, %v778_v49, %v777_v50  ;;  %v466_v60 = vsel %vm227_vm4, %v777_v50, %v778_v49 }
 0x3ac   : > { %v480_v53 = vsel %vm221_vm0, %v478_v51, 0.0  ;;  %v481_v54 = vsel %vm976_vm1, %v479_v52, 0.0  ;;  %v676_v62 = vpack.c.bf16 %v460_v40, %v467_v59  ;;  %v679_v12 = vpack.c.bf16 %v461_v41, %v466_v60 }
 0x3ad   : > { %v495_v55 = vpack.c.bf16 %v480_v53, %v480_v53  ;;  %v496_v56 = vpack.c.bf16 %v481_v54, %v481_v54 }
 0x3af   : > { %v508_v57 = vsel %vm269_vm2, %v495_v55, 0  ;;  %v511_v58 = vsel %vm269_vm2, %v496_v56, 0 }
 0x3b0   : > { %519 = vmatpush.bf16.msrb.mxu2 %v508_v57  ;;  %532 = vmatpush.bf16.msrb.mxu3 %v511_v58 }
 0x3b4   : > { %677 = vmatpush.bf16.msk.msrb.mxu2 %vm992_vm7, %v676_v62  ;;  %680 = vmatpush.bf16.msk.msrb.mxu3 %vm1000_vm8, %v679_v12 }
 0x3b7   : > { %649 = vmatmul.msk.bf16.vlgmr.msrb.gmra.mxu2 %vm265_vm9, %v486_v63  ;;  %650 = vmatmul.msk.bf16.vlgmr.msrb.gmra.mxu3 %vm265_vm9, %v486_v63 }
 0x43a   : > { %v522_v0 = vpop.f32.mrf.mxu2  ;;  %v535_v1 = vpop.f32.mrf.mxu3 }
 0x43b   : > { %v523_v2 = vadd.f32 %v522_v0, %v502_v6  ;;  %v536_v24 = vadd.f32 %v535_v1, %v502_v6 }
 0x43d   : > { %v539_v28 = vmax.f32 %v523_v2, 0.0  ;;  %v540_v3 = vmax.f32 %v536_v24, 0.0 }
 0x43f   : > { %541 = vst [vmem:[%s181_s7] sm:$0xff] %v539_v28 }
 0x440   : > { %542 = vst [vmem:[%s181_s7 + $0x8] sm:$0xff] %v540_v3 }
 0x441   : > { %837 = shalt.err (!%p834_p8)
}
 0x442   : > { %685 = dma.vmem_to_hbm [thread:$0]  (%p943_p5), %s558_s8, 256, %s560_s9, %s544_s16   ;;  %v524_v4 = vpop.f32.mrf.mxu2  ;;  %v537_v5 = vpop.f32.mrf.mxu3 }
 0x443 PF: > { %p697_p9 = scmp.ge.s32.totalorder %s876_s15, 2  ;;  %s571_s26 = sand.u32 1, %s864_s12  }
 0x444   : > { %s572_s27 = scalar_lea.sflag [#allocation5], %s571_s26 }
 0x445   : > { %p692_p10 = pnand %p697_p9, %p947_p6 }
 0x447   : > { %p693_p11 = pneg %p692_p10 }
 0x449   : > { %859 = dma.done.wait (%p693_p11), %s572_s27, 256  }
 0x44a   : > { %861 = vsyncadd (%p693_p11), %s572_s27, 4294967040  ;;  %p14_p5 = scmp.ge.s32.totalorder %s930_s18, 4   ;;  %s1129_s12 = smov %s868_s13 }
 0x44b   : > { %s1130_s13 = smov %s872_s14  ;;  %s1131_s14 = smov %s941_s21 }
 0x44c   : > { %s1132_s15 = smov %s930_s18  ;;  %16 = sbr.rel (!%p14_p5) target bundleno = 4 (0x4), region = 78 }
 0x451   :  { %578 = vsyncpa [#allocation4], 1 }
 0x452   :  { %580 = vsyncpa [#allocation4 + $0x1], 1 }
 0x453   :  { %581 = vsyncpa [#allocation5], 1 }
 0x454   :  { %583 = vsyncpa [#allocation5 + $0x1], 1 }

</bundles_post_ra>
